<compile_context>
chip_gen: v7x
topology: tpu7x:2x2x1
jax: 0.10.0
libtpu: 0.0.40
codegen_flags: <defaults>
</compile_context>

<pallas_src>
import jax
import jax.numpy as jnp
import numpy as np
from jax.experimental import pallas as pl
from jax.experimental.pallas import tpu as pltpu


# ----------------------------------------------------------------------------
# Kernels — one grid step processes a block of Bblk batch elements
# ----------------------------------------------------------------------------
def _sa_cat_self_kernel(x_ref, mask_ref, ws_ref, v_ref, o_ref):
    """Fast path: values is keys is query (x).  ws = (Wk + Wq)^T, shape (E, E)."""
    bb, lk, e = x_ref.shape
    x = x_ref[...]                                                    # (bb, Lk, E) f32

    # hidden @ W^T with query == keys:  x @ (Wk + Wq)^T  — concat eliminated, one MXU matmul.
    h = jnp.tanh(
        jnp.dot(x.reshape(bb * lk, e).astype(ws_ref.dtype), ws_ref[...],
                preferred_element_type=jnp.float32).reshape(bb, lk, e))

    # energy[b, k] = v . h[b, k, :]   (VPU mul + XLU lane reduce; no degenerate M=1 MXU op)
    energy = jnp.sum(h * v_ref[...], axis=-1, keepdims=True)          # (bb, Lk, 1) f32
    # masked_fill(mask == 0, -inf) as a single select
    energy = jnp.where(mask_ref[...] != 0.0, energy, -jnp.inf)

    # softmax over keys (sublane axis), exact normalisation
    m = jnp.max(energy, axis=1, keepdims=True)                        # (bb, 1, 1)
    p = jnp.exp(energy - m)
    attn = p / jnp.sum(p, axis=1, keepdims=True)                      # (bb, Lk, 1)

    # out[b, :] = sum_k attn[b, k] * values[b, k, :]   (VPU mul + sublane reduce)
    o_ref[...] = jnp.sum(attn * x, axis=1, keepdims=True).astype(o_ref.dtype)


def _sa_cat_general_kernel(vals_ref, keys_ref, qry_ref, mask_ref,
                           wk_ref, wq_ref, v_ref, o_ref):
    """General path: distinct values / keys / query (query_len in {1, key_len})."""
    bb, lk, e = keys_ref.shape
    lq = qry_ref.shape[1]
    mxu = wk_ref.dtype

    hk = jnp.dot(keys_ref[...].reshape(bb * lk, e).astype(mxu), wk_ref[...],
                 preferred_element_type=jnp.float32).reshape(bb, lk, e)
    hq = jnp.dot(qry_ref[...].reshape(bb * lq, e).astype(mxu), wq_ref[...],
                 preferred_element_type=jnp.float32).reshape(bb, lq, e)
    h = jnp.tanh(hk + hq)                       # broadcasts over keys when query_len == 1

    energy = jnp.sum(h * v_ref[...], axis=-1, keepdims=True)          # (bb, Lk, 1)
    energy = jnp.where(mask_ref[...] != 0.0, energy, -jnp.inf)

    m = jnp.max(energy, axis=1, keepdims=True)
    p = jnp.exp(energy - m)
    attn = p / jnp.sum(p, axis=1, keepdims=True)

    o_ref[...] = jnp.sum(attn * vals_ref[...], axis=1, keepdims=True).astype(o_ref.dtype)


# ----------------------------------------------------------------------------
# Wrapper
# ----------------------------------------------------------------------------
def _choose_block_batch(N, Lk, E, n_stream, block_batch=None):
    """Batch elements per grid step."""
    if block_batch is None:
        # ~512 rows per step approaches the measured HBM-roofline knee for the big matmul/DMAs
        bb = max(1, 512 // max(Lk, 1))
        # cap double-buffered streamed bytes (inputs + mask + out) at ~20 MiB — safe on
        # v7x's 64 MiB VMEM and well within v5e/v6e's 128 MiB
        per_b = 2 * 4 * (n_stream * Lk * E + Lk + E)
        bb = max(1, min(bb, (20 << 20) // max(per_b, 1)))
        if N >= 2:
            bb = min(bb, max(1, N // 2))   # keep >= 2 grid steps: megacore / v7x's 2 TCs
    else:
        bb = max(1, int(block_batch))
    bb = min(bb, N)
    while N % bb:                          # avoid ragged final block
        bb -= 1
    return bb


def self_attention_cat_pallas(values, keys, query, mask, W, v, *,
                              mxu_dtype=jnp.bfloat16, block_batch=None):
    """values/keys: (N, Lk, E); query: (N, Lq, E) with Lq in {1, Lk};
    mask: key mask of shape (N, 1, 1, Lk) / (N, 1, Lk) / (N, Lk) or None;
    W: (1, E, 2E) parameter; v: (1, 1, E) parameter.  Returns (N, Lq, E) float32."""
    N, Lk, E = keys.shape
    Lq = query.shape[1]
    assert values.shape == (N, Lk, E)
    assert query.shape[0] == N and query.shape[2] == E
    assert Lq in (1, Lk), "query_len must be 1 or equal key_len (torch cat requirement)"

    # key-only mask as an f32 (N, Lk, 1) column (matches the in-kernel sublane energy layout)
    if mask is None:
        mask_col = jnp.ones((N, Lk, 1), jnp.float32)
    else:
        mask_arr = jnp.asarray(mask, jnp.float32)
        if mask_arr.size == Lk:                       # broadcast-over-batch mask
            mask_arr = jnp.broadcast_to(mask_arr.reshape(1, Lk), (N, Lk))
        assert mask_arr.size == N * Lk, (
            "only key masks are supported; per-query masks need a full (Lq, Lk) energy")
        mask_col = mask_arr.reshape(N, Lk, 1)

    # Parameters: split W into its key / query halves (transposed so the kernel matmuls are
    # plain row-major (rows, E) @ (E, E)); done once in the wrapper.
    w2d = jnp.asarray(W, jnp.float32).reshape(E, 2 * E)
    wkT = w2d[:, :E].T
    wqT = w2d[:, E:].T
    v_row = jnp.asarray(v, jnp.float32).reshape(1, E)

    self_path = (keys is query) and (values is keys) and (Lq == Lk)
    n_stream = 1 if self_path else 3
    bb = _choose_block_batch(N, Lk, E, n_stream, block_batch)
    grid = (N // bb,)

    # VMEM budget / scoped limit (streams are already capped by _choose_block_batch)
    itemsize_w = jnp.dtype(mxu_dtype).itemsize
    streamed = 4 * (n_stream * bb * Lk * E + bb * Lk + bb * E)
    resident = 2 * E * E * itemsize_w + 4 * E
    vmem_limit = int(min(48 << 20, max(32 << 20, 3 * streamed + resident)))

    x_spec = pl.BlockSpec((bb, Lk, E), lambda n: (n, 0, 0))
    mask_spec = pl.BlockSpec((bb, Lk, 1), lambda n: (n, 0, 0))
    w_spec = pl.BlockSpec((E, E), lambda n: (0, 0))       # VMEM-resident across grid steps
    v_spec = pl.BlockSpec((1, E), lambda n: (0, 0))
    out_spec = pl.BlockSpec((bb, 1, E), lambda n: (n, 0, 0))
    out_shape = jax.ShapeDtypeStruct((N, 1, E), jnp.float32)
    params = pltpu.CompilerParams(dimension_semantics=("parallel",),
                                  vmem_limit_bytes=vmem_limit)

    if self_path:
        wsT = (w2d[:, :E] + w2d[:, E:]).T.astype(mxu_dtype)    # fold Wq into Wk
        out = pl.pallas_call(
            _sa_cat_self_kernel,
            out_shape=out_shape,
            grid=grid,
            in_specs=[x_spec, mask_spec, w_spec, v_spec],
            out_specs=out_spec,
            compiler_params=params,
        )(keys, mask_col, wsT, v_row)
    else:
        q_spec = pl.BlockSpec((bb, Lq, E), lambda n: (n, 0, 0))
        out = pl.pallas_call(
            _sa_cat_general_kernel,
            out_shape=out_shape,
            grid=grid,
            in_specs=[x_spec, x_spec, q_spec, mask_spec, w_spec, w_spec, v_spec],
            out_specs=out_spec,
            compiler_params=params,
        )(values, keys, query, mask_col,
          wkT.astype(mxu_dtype), wqT.astype(mxu_dtype), v_row)

    # Every output query row is identical — broadcast outside the kernel (no redundant
    # HBM writeback inside the kernel; a jitted consumer can fuse this away).
    if Lq > 1:
        return jnp.broadcast_to(out, (N, Lq, E))
    return out


# ----------------------------------------------------------------------------
# Pure-JAX reference (direct transcription of the torch forward)
# ----------------------------------------------------------------------------
def self_attention_cat_ref(values, keys, query, mask, W, v):
    N, key_len, E = keys.shape
    query_len = query.shape[1]
    hi = jax.lax.Precision.HIGHEST
    if query_len == 1:
        query = jnp.broadcast_to(query, (N, key_len, E))
    hidden = jnp.concatenate([keys, query], axis=2)                        # (N, Lk, 2E)
    v_exp = jnp.broadcast_to(v, (N, query_len, E))                         # (N, Lq, E)
    W_exp = jnp.broadcast_to(W, (N, E, 2 * E))                             # (N, E, 2E)
    pre = jnp.einsum("nec,nkc->nek", W_exp, hidden, precision=hi)          # W @ hidden^T
    energy = jnp.einsum("nqe,nek->nqk", v_exp, jnp.tanh(pre), precision=hi)
    if mask is not None:
        m = jnp.squeeze(jnp.asarray(mask, jnp.float32), axis=1)            # mask.squeeze(1)
        energy = jnp.where(m == 0.0, -jnp.inf, energy)
    attns = jax.nn.softmax(energy, axis=2)
    return jnp.einsum("nqk,nke->nqe", attns, values, precision=hi)


# ----------------------------------------------------------------------------
if __name__ == "__main__":
    N, E = 2, 128          # embed_size=128 (heads only constrain divisibility, unused here)
    seq = 16               # value_len = key_len = query_len

    root = jax.random.PRNGKey(0)
    kx, kq, kva, kw, kvp = jax.random.split(root, 5)

    x = jax.random.normal(kx, (N, seq, E), jnp.float32)
    q_alt = jax.random.normal(kq, (N, seq, E), jnp.float32)
    vals_alt = jax.random.normal(kva, (N, seq, E), jnp.float32)

    # xavier_uniform-style parameter scales
    bw = (6.0 / (E + 2 * E)) ** 0.5
    W = jax.random.uniform(kw, (1, E, 2 * E), jnp.float32, -bw, bw)
    bv = (6.0 / (1 + E)) ** 0.5
    v = jax.random.uniform(kvp, (1, 1, E), jnp.float32, -bv, bv)

    # key mask (N, 1, 1, seq): 1 = keep; mask out the last 3 key positions
    mask = jnp.ones((N, 1, 1, seq), jnp.float32).at[:, :, :, -3:].set(0.0)

    # Tolerances reflect the bf16 MXU operands recommended for v5e/v6e/v7x (softmax and
    # accumulation stay f32; no approximate reciprocal is used).
    TOL = dict(rtol=5e-2, atol=5e-2)

    # 1) self-attention fast path (values is keys is query), bf16 MXU operands (default)
    out = jax.block_until_ready(self_attention_cat_pallas(x, x, x, mask, W, v))
    ref = self_attention_cat_ref(x, x, x, mask, W, v)
    np.testing.assert_allclose(np.asarray(out), np.asarray(ref), **TOL)
    assert out.shape == (N, seq, E)

    # 2) same path with f32 MXU operands (accuracy knob)
    out32 = jax.block_until_ready(
        self_attention_cat_pallas(x, x, x, mask, W, v, mxu_dtype=jnp.float32))
    np.testing.assert_allclose(np.asarray(out32), np.asarray(ref), **TOL)

    # 3) general path: distinct values / keys / query (query_len == key_len)
    outg = jax.block_until_ready(self_attention_cat_pallas(vals_alt, x, q_alt, mask, W, v))
    refg = self_attention_cat_ref(vals_alt, x, q_alt, mask, W, v)
    np.testing.assert_allclose(np.asarray(outg), np.asarray(refg), **TOL)
    assert outg.shape == (N, seq, E)

    # 4) general path: query_len == 1 (exercises the torch expand branch)
    q1 = q_alt[:, :1, :]
    out1 = jax.block_until_ready(self_attention_cat_pallas(x, x, q1, mask, W, v))
    ref1 = self_attention_cat_ref(x, x, q1, mask, W, v)
    np.testing.assert_allclose(np.asarray(out1), np.asarray(ref1), **TOL)
    assert out1.shape == (N, 1, E)

    print("KERNEL_OK")
</pallas_src>

<mosaic_0001>
module attributes {stable_mosaic.version = 11 : i64} {
  func.func @_sa_cat_self_kernel(%arg0: i32, %arg1: memref<1x16x128xf32, #tpu.memory_space<vmem>>, %arg2: memref<1x16x1xf32, #tpu.memory_space<vmem>>, %arg3: memref<128x128xbf16, #tpu.memory_space<vmem>>, %arg4: memref<1x128xf32, #tpu.memory_space<vmem>>, %arg5: memref<1x1x128xf32, #tpu.memory_space<vmem>>) attributes {dimension_semantics = [#tpu.dimension_semantics<parallel>], iteration_bounds = array<i64: 2>, scalar_prefetch = 0 : i64, scratch_operands = 0 : i64, tpu.core_type = #tpu.core_type<tc>, window_params = [{transform_indices = @transform_0, window_bounds = array<i64: 1, 16, 128>}, {transform_indices = @transform_1, window_bounds = array<i64: 1, 16, 1>}, {pipeline_mode = #tpu.pipeline_mode<synchronous>, transform_indices = @transform_2, window_bounds = array<i64: 128, 128>}, {pipeline_mode = #tpu.pipeline_mode<synchronous>, transform_indices = @transform_3, window_bounds = array<i64: 1, 128>}, {transform_indices = @transform_4, window_bounds = array<i64: 1, 1, 128>}]} {
    %c0 = arith.constant 0 : index
    %c0_0 = arith.constant 0 : index
    %c0_1 = arith.constant 0 : index
    %0 = vector.load %arg1[%c0, %c0_0, %c0_1] : memref<1x16x128xf32, #tpu.memory_space<vmem>>, vector<1x16x128xf32>
    %1 = vector.shape_cast %0 : vector<1x16x128xf32> to vector<16x128xf32>
    %2 = arith.truncf %1 : vector<16x128xf32> to vector<16x128xbf16>
    %c0_2 = arith.constant 0 : index
    %c0_3 = arith.constant 0 : index
    %3 = vector.load %arg3[%c0_2, %c0_3] : memref<128x128xbf16, #tpu.memory_space<vmem>>, vector<128x128xbf16>
    %cst = arith.constant dense<0.000000e+00> : vector<16x128xf32>
    %4 = tpu.matmul %2, %3, %cst {dimension_numbers = #tpu.dot_dimension_numbers<[1], [0], [0], [1], [0, 0, 1, 1], [], []>} : vector<16x128xbf16>, vector<128x128xbf16>, vector<16x128xf32> -> vector<16x128xf32>
    %5 = vector.shape_cast %4 : vector<16x128xf32> to vector<1x16x128xf32>
    %6 = math.tanh %5 : vector<1x16x128xf32>
    %c0_4 = arith.constant 0 : index
    %c0_5 = arith.constant 0 : index
    %7 = vector.load %arg4[%c0_4, %c0_5] : memref<1x128xf32, #tpu.memory_space<vmem>>, vector<1x128xf32>
    %8 = vector.shape_cast %7 : vector<1x128xf32> to vector<1x1x128xf32>
    %9 = vector.broadcast %8 : vector<1x1x128xf32> to vector<1x16x128xf32>
    %10 = arith.mulf %6, %9 : vector<1x16x128xf32>
    %cst_6 = arith.constant dense<0.000000e+00> : vector<1x16xf32>
    %11 = vector.multi_reduction <add>, %10, %cst_6 [2] : vector<1x16x128xf32> to vector<1x16xf32>
    %12 = vector.shape_cast %11 : vector<1x16xf32> to vector<1x16x1xf32>
    %c0_7 = arith.constant 0 : index
    %c0_8 = arith.constant 0 : index
    %c0_9 = arith.constant 0 : index
    %13 = vector.load %arg2[%c0_7, %c0_8, %c0_9] : memref<1x16x1xf32, #tpu.memory_space<vmem>>, vector<1x16x1xf32>
    %cst_10 = arith.constant 0.000000e+00 : f32
    %14 = vector.broadcast %cst_10 : f32 to vector<1x16x1xf32>
    %15 = arith.cmpf one, %13, %14 : vector<1x16x1xf32>
    %cst_11 = arith.constant 0xFF800000 : f32
    %16 = vector.broadcast %cst_11 : f32 to vector<1x16x1xf32>
    %17 = arith.select %15, %12, %16 : vector<1x16x1xi1>, vector<1x16x1xf32>
    %cst_12 = arith.constant dense<0xFF800000> : vector<1x1xf32>
    %18 = vector.multi_reduction <maximumf>, %17, %cst_12 [1] : vector<1x16x1xf32> to vector<1x1xf32>
    %19 = vector.shape_cast %18 : vector<1x1xf32> to vector<1x1x1xf32>
    %20 = vector.broadcast %19 : vector<1x1x1xf32> to vector<1x16x1xf32>
    %21 = arith.subf %17, %20 : vector<1x16x1xf32>
    %22 = math.exp %21 : vector<1x16x1xf32>
    %cst_13 = arith.constant dense<0.000000e+00> : vector<1x1xf32>
    %23 = vector.multi_reduction <add>, %22, %cst_13 [1] : vector<1x16x1xf32> to vector<1x1xf32>
    %24 = vector.shape_cast %23 : vector<1x1xf32> to vector<1x1x1xf32>
    %25 = vector.broadcast %24 : vector<1x1x1xf32> to vector<1x16x1xf32>
    %26 = arith.divf %22, %25 : vector<1x16x1xf32>
    %27 = vector.broadcast %26 : vector<1x16x1xf32> to vector<1x16x128xf32>
    %28 = arith.mulf %27, %0 : vector<1x16x128xf32>
    %cst_14 = arith.constant dense<0.000000e+00> : vector<1x128xf32>
    %29 = vector.multi_reduction <add>, %28, %cst_14 [1] : vector<1x16x128xf32> to vector<1x128xf32>
    %30 = vector.shape_cast %29 : vector<1x128xf32> to vector<1x1x128xf32>
    %c0_15 = arith.constant 0 : index
    %c0_16 = arith.constant 0 : index
    %c0_17 = arith.constant 0 : index
    %31 = vector.load %arg5[%c0_15, %c0_16, %c0_17] : memref<1x1x128xf32, #tpu.memory_space<vmem>>, vector<1x1x128xf32>
    tpu.vector_store %arg5[%c0_15, %c0_16, %c0_17], %30 {strides = array<i32>} : memref<1x1x128xf32, #tpu.memory_space<vmem>>, vector<1x1x128xf32>,
    return
  }
  func.func @transform_0(%arg0: i32) -> (i32, i32, i32) {
    %c0_i32 = arith.constant 0 : i32
    %c0_i32_0 = arith.constant 0 : i32
    %c0_i32_1 = arith.constant 0 : i32
    return %arg0, %c0_i32, %c0_i32_0 : i32, i32, i32
  }
  func.func @transform_1(%arg0: i32) -> (i32, i32, i32) {
    %c0_i32 = arith.constant 0 : i32
    %c0_i32_0 = arith.constant 0 : i32
    %c0_i32_1 = arith.constant 0 : i32
    return %arg0, %c0_i32, %c0_i32_0 : i32, i32, i32
  }
  func.func @transform_2(%arg0: i32) -> (i32, i32) {
    %c0_i32 = arith.constant 0 : i32
    %c0_i32_0 = arith.constant 0 : i32
    %c0_i32_1 = arith.constant 0 : i32
    return %c0_i32, %c0_i32_0 : i32, i32
  }
  func.func @transform_3(%arg0: i32) -> (i32, i32) {
    %c0_i32 = arith.constant 0 : i32
    %c0_i32_0 = arith.constant 0 : i32
    %c0_i32_1 = arith.constant 0 : i32
    return %c0_i32, %c0_i32_0 : i32, i32
  }
  func.func @transform_4(%arg0: i32) -> (i32, i32, i32) {
    %c0_i32 = arith.constant 0 : i32
    %c0_i32_0 = arith.constant 0 : i32
    %c0_i32_1 = arith.constant 0 : i32
    return %arg0, %c0_i32, %c0_i32_0 : i32, i32, i32
  }
}

</mosaic_0001>

<bundles_post_ra>
// kernel: tpu_custom_call.1
= control target key start
LH: loop header
LB: loop body
LE: loop exit
PB: predicated region body
PF: predicated region fallthrough
CT: control target
= control target key end

     0   :  { %9 = vsyncpa [#allocation3], 0  ;;  %s916_s0 = inlined_call_operand.vmem [shape: f32[2,16,128], index: 0, kind: input, shape index: {}]   ;;  %s917_s1 = inlined_call_operand.vmem [shape: f32[2,16,1], index: 1, kind: input, shape index: {}]   ;;  %s918_s2 = inlined_call_operand.hbm [shape: bf16[128,128], index: 2, kind: input, shape index: {}]   ;;  %s919_s3 = inlined_call_operand.vmem [shape: f32[1,128], index: 3, kind: input, shape index: {}]   ;;  %s920_s4 = inlined_call_operand.hbm [shape: f32[2,1,128], index: 4, kind: output, shape index: {}]  }
   0x1   :  { %10 = vsyncpa [#allocation4], 0 }
   0x2   :  { %12 = vsyncpa [#allocation4 + $0x1], 0  ;;  %s756_s15 = smov 0   ;;  %s758_s16 = smov 0  }
   0x3   :  { %s760_s17 = smov 0   ;;  %s762_s18 = smov 0  }
   0x4 LB: > { %s777_s19 = sadd.s32 4294967295, %s722_s18   ;;  %s500_s20 = sadd.s32 4294967294, %s722_s18   ;;  %s722_s18 = sphi %s762_s18, %s936_s18   ;;  %s718_s17 = sphi %s760_s17, %s935_s17   ;;  %s714_s16 = sphi %s758_s16, %s934_s16   ;;  %s710_s15 = sphi %s756_s15, %s933_s15  }
   0x5   : > { %s781_s21 = sadd.s32 1, %s722_s18   ;;  %s119_s22 = sadd.s32 1, %s718_s17 }
   0x6   : > { %s116_s23 = ssub.s32 %s722_s18, %s781_s21  ;;  %p129_p0 = scmp.ne.s32.totalorder %s718_s17, %s714_s16 }
   0x7   : > { %p117_p1 = scmp.eq.s32.totalorder %s116_s23, 0  ;;  %p130_p2 = scmp.eq.s32.totalorder %s777_s19, 1 }
   0x8   : > { %p135_p3 = scmp.ne.s32.totalorder %s714_s16, %s710_s15  ;;  %p136_p4 = scmp.eq.s32.totalorder %s500_s20, 1 }
   0x9   : > { %s792_s24 = scalar_select %p117_p1, %s718_s17, %s119_s22  }
   0xa   : > { %p794_p5 = por %p130_p2, %p129_p0  ;;  %p798_p6 = por %p136_p4, %p135_p3 }
   0xb   : > { %p501_p7 = scmp.ge.s32.totalorder %s722_s18, 1  ;;  %p143_p8 = scmp.lt.s32.totalorder %s722_s18, 3 }
   0xc   : > { %s924_s25 = scalar_select %p794_p5, 1, 0 }
   0xd   : > { %s925_s26 = scalar_select %p798_p6, 1, 0 }
   0xe   : > { %p921_p9 = scmp.eq.s32.totalorder %s777_s19, 0  ;;  %p805_p10 = pnand %p501_p7, %p143_p8 }
   0xf   : > { %s724_s28 = smov [#allocation2]   ;;  %s628_s7 = scalar_lea.hbm %s918_s2, 1024 }
  0x10   : > { %s926_s27 = scalar_select %p805_p10, 1, 0 }
  0x11   : > { %s155_s29 = sshll.u32 %s724_s28, 4  ;;  %p559_p11 = pneg %p805_p10  ;;  %s156_s29 = int_to_ptr.vmem [resolvable:$true] %s155_s29 }
  0x12   : > { %p629_p13 = scmp.ne.s32.totalorder %s918_s2, %s628_s7  ;;  %p635_p3 = scmp.lt.u32.totalorder %s628_s7, %s918_s2 }
  0x13   : > { %p813_p12 = pnand %p921_p9, %p559_p11 }
  0x15   : > { %p630_p0 = pneg %p813_p12 }
  0x17   : > { %p631_p1 = pnand %p630_p0, %p629_p13 }
  0x19   : > { %p632_p2 = pneg %p631_p1 }
  0x1b   : > { %p637_p4 = pnand %p635_p3, %p632_p2 }
  0x1d   : > { %640 = shalt.err (!%p637_p4)
}
  0x1e   : > { %s641_s12 = scalar_lea.vmem %s156_s29, 1024  ;;  %p649_p9 = scmp.lt.s32.totalorder %s156_s29, %s156_s29 }
  0x1f   : > { %p642_p7 = scmp.ne.s32.totalorder %s156_s29, %s641_s12  ;;  %p650_p6 = scmp.lt.s32.totalorder %s641_s12, %s641_s12 }
  0x21   : > { %p644_p8 = pnand %p642_p7, %p630_p0  ;;  %p651_p5 = por %p650_p6, %p649_p9 }
  0x23   : > { %p645_p11 = pneg %p644_p8 }
  0x25   : > { %p652_p10 = pnand %p651_p5, %p645_p11 }
  0x27   : > { %655 = shalt.err (!%p652_p10)
}
  0x28   : > { %s725_s13 = smov 64   ;;  %s726_s14 = smov 4  }
  0x29   : > { %562 = dma.hbm_to_vmem [thread:$0]  (!%p813_p12), %s918_s2, 1024, %s156_s29, [#allocation3], %s725_s13, %s725_s13, %s726_s14  }
  0x2a   : > { %p928_p13 = scmp.ne.s32.totalorder %s926_s27, 0 }
  0x2b   : > { %p929_p1 = scmp.eq.s32.totalorder (!%p928_p13), %s777_s19, 0 }
  0x2c   : > { %190 = sbr.rel (%p928_p13) target bundleno = 678 (0x2a6), region = 36 }
  0x33   : > { %701 = dma.done.wait (%p929_p1), [#allocation3], 1024   ;;  %p930_p0 = pmov %p929_p1 }
  0x34   : > { %v727_v0 = vmov 0.0   ;;  %vm728_vm0 = vmmov 0   ;;  %v610_v1 = vld [vmem:[#allocation2] sm:$0xff]   ;;  %v611_v2 = vld [vmem:[#allocation2 + $0x8] sm:$0xff]   ;;  %v612_v3 = vld [vmem:[#allocation2 + $0x10] sm:$0xff]   ;;  %p220_p5 = scmp.lt.s32.totalorder %s777_s19, 1 }
  0x35   : > { %703 = vsyncadd (%p930_p0), [#allocation3], 4294966272  ;;  %533 = vmatprep.subr.bf16.mxu0 %v727_v0  ;;  %549 = vmatprep.mubr.msk.bf16.mxu0 %vm728_vm0, %v727_v0  ;;  %v613_v4 = vld [vmem:[#allocation2 + $0x18] sm:$0xff]   ;;  %v614_v5 = vld [vmem:[#allocation2 + $0x20] sm:$0xff]   ;;  %v729_v21 = vmov 0   ;;  %vm360_vm3 = vcmask 7168  }
  0x36   : > { %534 = vmatpush3.bf16.msra.mxu0 %v610_v1  ;;  %s841_s23 = scalar_select %p220_p5, %s777_s19, 1  ;;  %v615_v6 = vld [vmem:[#allocation2 + $0x28] sm:$0xff]   ;;  %v616_v7 = vld [vmem:[#allocation2 + $0x30] sm:$0xff]   ;;  %v617_v8 = vld [vmem:[#allocation2 + $0x38] sm:$0xff]   ;;  %608 = vset.pattern.permute.xlu1 %v729_v21 }
  0x37   : > { %535 = vmatprep.subr.bf16.mxu0 %v727_v0  ;;  %v518_v16 = vld [vmem:[%s919_s3] ss:$0 sm:$0xff]  ;;  %609 = vset.pattern.permute.xlu0 %v729_v21  ;;  %s218_s10 = sand.u32 1, %s714_s16   ;;  %s519_s11 = sshll.u32 %s777_s19, 4 }
  0x38   : > { %s522_s27 = sshll.u32 %s841_s23, 4  ;;  %s219_s12 = scalar_lea.vmem [#allocation5], %s218_s10 }
  0x39   : > { %s224_s30 = scalar_lea.vmem %s916_s0, %s522_s27  ;;  %s229_s9 = scalar_lea.vmem %s917_s1, %s522_s27 }
  0x3a   : > { %536 = vmatpush3.bf16.msra.mxu0 %v611_v2  ;;  %v849_v9 = vld [vmem:[%s224_s30] sm:$0xff]  ;;  %v851_v10 = vld [vmem:[%s224_s30 + $0x8] sm:$0xff]  ;;  %s421_s13 = sshll.u32 %s219_s12, 4  ;;  %s874_s22 = scalar_lea.hbm %s920_s4, %s519_s11  ;;  %s876_s13 = int_to_ptr.vmem [resolvable:$true] %s421_s13 }
  0x3b   : > { %537 = vmatprep.subr.bf16.mxu0 %v727_v0  ;;  %v233_v11 = vpack.c.bf16 %v851_v10, %v849_v9  ;;  %v354_v22 = vld [vmem:[%s229_s9] sm:$0xff]  ;;  %v355_v23 = vld [vmem:[%s229_s9 + $0x8] sm:$0xff]  ;;  %s409_s23 = scalar_lea.sflag [#allocation4], %s218_s10  ;;  %s656_s27 = scalar_lea.vmem %s876_s13, 16 }
  0x3c   : > { %vm356_vm1 = vcmp.ne.f32.partialorder %v354_v22, 0.0  ;;  %vm357_vm2 = vcmp.ne.f32.partialorder %v355_v23, 0.0  ;;  %p657_p6 = scmp.ne.s32.totalorder %s876_s13, %s656_s27  ;;  %p931_p9 = scmp.ne.s32.totalorder %s924_s25, 0 }
  0x3d   : > { %s730_s19 = smov [#allocation5]  }
  0x3e   : > { %538 = vmatpush3.bf16.msra.mxu0 %v612_v3  ;;  %p658_p10 = pnand %p657_p6, %p931_p9  ;;  %s660_s28 = sshll.u32 %s730_s19, 4  ;;  %s661_s28 = int_to_ptr.vmem [resolvable:$false] %s660_s28 }
  0x3f   : > { %539 = vmatprep.subr.bf16.mxu0 %v727_v0  ;;  %s662_s29 = scalar_lea.vmem %s661_s28, 32  ;;  %p663_p2 = scmp.lt.s32.totalorder %s876_s13, %s661_s28 }
  0x40   : > { %p659_p12 = pneg %p658_p10  ;;  %p664_p3 = scmp.lt.s32.totalorder %s662_s29, %s656_s27 }
  0x42   : > { %540 = vmatpush3.bf16.msra.mxu0 %v613_v4  ;;  %p665_p4 = por %p664_p3, %p663_p2 }
  0x43   : > { %541 = vmatprep.subr.bf16.mxu0 %v727_v0 }
  0x44   : > { %p666_p7 = pnand %p665_p4, %p659_p12 }
  0x46   : > { %542 = vmatpush3.bf16.msra.mxu0 %v614_v5 }
  0x47   : > { %543 = vmatprep.subr.bf16.mxu0 %v727_v0 }
  0x4a   : > { %544 = vmatpush3.bf16.msra.mxu0 %v615_v6 }
  0x4b   : > { %545 = vmatprep.subr.bf16.mxu0 %v727_v0 }
  0x4e   : > { %546 = vmatpush3.bf16.msra.mxu0 %v616_v7 }
  0x4f   : > { %547 = vmatprep.subr.bf16.mxu0 %v727_v0 }
  0x52   : > { %548 = vmatpush3.bf16.msra.mxu0 %v617_v8 }
  0x55   : > { %550 = vmatmul.mubr.bf16.vlgmr.msra.gmra.mrb[0].mxu0 %v233_v11 }
 0x128   : > { %v332_v12 = vpop.f32.mrb[0].mxu0 }
 0x129   : > { %618 = vtanh.f32 %v332_v12  ;;  %v551_v13 = vpop.f32.mrb[1].mxu0 }
 0x12a   : > { %v335_v14 = vpop.f32.mrb[2].mxu0 }
 0x12b   : > { %620 = vtanh.f32 %v335_v14  ;;  %v552_v15 = vpop.f32.mrb[3].mxu0 }
 0x133   : > { %v619_v17 = vpop.eup %618 }
 0x134   : > { %v348_v18 = vmul.f32 %v619_v17, %v518_v16 }
 0x135   : > { %v621_v19 = vpop.eup %620 }
 0x136   : > { %350 = vadd.xlane.f32.xlu0 %v348_v18  ;;  %v349_v20 = vmul.f32 %v621_v19, %v518_v16 }
 0x13a   : > { %352 = vadd.xlane.f32.xlu0 %v349_v20 }
 0x1c3   : > { %v351_v24 = vpop.xlane.xlu0 %350 }
 0x1c4   : > { %v358_v25 = vsel %vm356_vm1, %v351_v24, -inf }
 0x1c5   : > { %v361_v28 = vsel %vm360_vm3, %v358_v25, -inf }
 0x1c7   : > { %v353_v26 = vpop.xlane.xlu0 %352 }
 0x1c8   : > { %v359_v27 = vsel %vm357_vm2, %v353_v26, -inf }
 0x1c9   : > { %v362_v29 = vsel %vm360_vm3, %v359_v27, -inf }
 0x1ca   : > { %v363_v30 = vmax.f32 %v361_v28, %v362_v29 }
 0x1cc   : > { %v364_v31 = vrot.slane %v363_v30, 4 }
 0x1ce   : > { %v365_v32 = vmax.f32 %v363_v30, %v364_v31 }
 0x1d0   : > { %v366_v33 = vrot.slane %v365_v32, 2 }
 0x1d2   : > { %v367_v34 = vmax.f32 %v365_v32, %v366_v33 }
 0x1d4   : > { %v368_v35 = vrot.slane %v367_v34, 1 }
 0x1d6   : > { %v369_v36 = vmax.f32 %v367_v34, %v368_v35 }
 0x1d8   : > { %v370_v37 = vsub.f32 %v358_v25, %v369_v36  ;;  %v371_v38 = vsub.f32 %v359_v27, %v369_v36 }
 0x1da   : > { %v372_v39 = vmul.f32 1.442695, %v370_v37  ;;  %v374_v40 = vmul.f32 1.442695, %v371_v38 }
 0x1dc   : > { %622 = vpow2.f32 %v372_v39 }
 0x1dd   : > { %624 = vpow2.f32 %v374_v40 }
 0x1e6   : > { %v623_v41 = vpop.eup %622 }
 0x1e7   : > { %v625_v42 = vpop.eup %624  ;;  %v376_v43 = vsel %vm360_vm3, %v623_v41, 0.0 }
 0x1e8   : > { %v377_v44 = vsel %vm360_vm3, %v625_v42, 0.0 }
 0x1e9   : > { %v378_v45 = vadd.f32 %v377_v44, %v376_v43 }
 0x1eb   : > { %v379_v46 = vrot.slane %v378_v45, 4 }
 0x1ed   : > { %v380_v47 = vadd.f32 %v379_v46, %v378_v45 }
 0x1ef   : > { %v381_v48 = vrot.slane %v380_v47, 2 }
 0x1f1   : > { %v382_v49 = vadd.f32 %v381_v48, %v380_v47 }
 0x1f3   : > { %v383_v50 = vrot.slane %v382_v49, 1 }
 0x1f5   : > { %v384_v51 = vadd.f32 %v383_v50, %v382_v49 }
 0x1f7   : > { %626 = vrcp.f32 %v384_v51 }
 0x201   : > { %v627_v52 = vpop.eup %626 }
 0x202   : > { %v386_v53 = vmul.f32 %v627_v52, %v623_v41  ;;  %v387_v54 = vmul.f32 %v627_v52, %v625_v42 }
 0x204   : > { %390 = vperm.xlu1 %608, %v386_v53  }
 0x208   : > { %395 = vperm.xlu1 %608, %v387_v54  }
 0x283   : > { %v391_v55 = vpop.permute.xlu1 %390 }
 0x284   : > { %v398_v57 = vmul.f32 %v391_v55, %v849_v9 }
 0x287   : > { %v396_v56 = vpop.permute.xlu1 %395 }
 0x288   : > { %v399_v58 = vmul.f32 %v396_v56, %v851_v10 }
 0x28a   : > { %v400_v59 = vadd.f32 %v399_v58, %v398_v57 }
 0x28c   : > { %v401_v60 = vrot.slane %v400_v59, 4 }
 0x28e   : > { %v402_v61 = vadd.f32 %v401_v60, %v400_v59 }
 0x290   : > { %v403_v62 = vrot.slane %v402_v61, 2 }
 0x292   : > { %v404_v63 = vadd.f32 %v403_v62, %v402_v61 }
 0x294   : > { %v405_v0 = vrot.slane %v404_v63, 1 }
 0x296   : > { %v406_v1 = vadd.f32 %v405_v0, %v404_v63 }
 0x298   : > { %407 = vst [vmem:[%s219_s12] sm:$0x1] %v406_v1 }
 0x299   : > { %669 = shalt.err (!%p666_p7)
}
 0x29a   : > { %s670_s30 = scalar_lea.hbm %s874_s22, 16  ;;  %s674_s7 = scalar_lea.hbm %s920_s4, 32 }
 0x29b   : > { %p671_p8 = scmp.ne.s32.totalorder %s874_s22, %s670_s30  ;;  %p675_p1 = scmp.lt.u32.totalorder %s874_s22, %s920_s4 }
 0x29c   : > { %p676_p0 = scmp.lt.u32.totalorder %s674_s7, %s670_s30  ;;  %p678_p6 = scmp.lt.u32.totalorder %s670_s30, %s874_s22 }
 0x29d   : > { %p672_p11 = pnand %p671_p8, %p931_p9 }
 0x29e   : > { %p677_p5 = por %p676_p0, %p675_p1 }
 0x29f   : > { %p673_p13 = pneg %p672_p11 }
 0x2a0   : > { %p679_p10 = por %p678_p6, %p677_p5 }
 0x2a2   : > { %p680_p12 = pnand %p679_p10, %p673_p13 }
 0x2a4   : > { %683 = shalt.err (!%p680_p12)
}
 0x2a5   : > { %557 = dma.vmem_to_hbm [thread:$0]  (%p931_p9), %s876_s13, 16, %s874_s22, %s409_s23  }
 0x2a6 PF: > { %p569_p2 = scmp.ge.s32.totalorder %s722_s18, 2  ;;  %s433_s10 = sand.u32 1, %s710_s15  }
 0x2a7   : > { %p932_p3 = scmp.ne.s32.totalorder %s925_s26, 0  ;;  %s434_s11 = scalar_lea.sflag [#allocation4], %s433_s10 }
 0x2a9   : > { %p564_p4 = pnand %p569_p2, %p932_p3 }
 0x2ab   : > { %705 = dma.done.wait (!%p564_p4), %s434_s11, 16  }
 0x2ac   : > { %707 = vsyncadd (!%p564_p4), %s434_s11, 4294967280  ;;  %p15_p7 = scmp.ge.s32.totalorder %s781_s21, 4   ;;  %s933_s15 = smov %s714_s16 }
 0x2ad   : > { %s934_s16 = smov %s718_s17  ;;  %s935_s17 = smov %s792_s24 }
 0x2ae   : > { %s936_s18 = smov %s781_s21  ;;  %17 = sbr.rel (!%p15_p7) target bundleno = 4 (0x4), region = 79 }
 0x2b5   :  { %438 = vsyncpa [#allocation3], 1 }
 0x2b6   :  { %440 = vsyncpa [#allocation3 + $0x1], 1 }
 0x2b7   :  { %441 = vsyncpa [#allocation4], 1 }
 0x2b8   :  { %443 = vsyncpa [#allocation4 + $0x1], 1 }

</bundles_post_ra>
